<compile_context>
chip_gen: v7x
topology: tpu7x:2x2x1
jax: 0.10.0
libtpu: 0.0.40
codegen_flags: <defaults>
</compile_context>

<pallas_src>
import functools

import jax
import jax.numpy as jnp
from jax.experimental import pallas as pl
from jax.experimental.pallas import tpu as pltpu


def _round_up(a, b):
    return (a + b - 1) // b * b


# --------------------------------------------------------------------------- #
# Kernel
# --------------------------------------------------------------------------- #
def _glu_kernel(x_ref, wf_ref, bf_ref, o_ref, *scratch, tn, k_tiles):
    """Grid = (m_tiles, n_tiles, k_tiles); K (reduction) is the last/fastest axis.

    x_ref : (bm, tk)         activation tile (already matmul_dtype)
    wf_ref: (tk, 2*tn)       fused weight tile  [W1_tile | W2_tile]
    bf_ref: (1, 2*tn)        fused bias tile    [b1_tile | b2_tile]
    o_ref : (bm, tn)         output tile
    scratch: () if k_tiles == 1 else ((bm, 2*tn) f32 accumulator,)
    """
    # One fused MXU matmul covering both linear layers; f32 accumulation.
    y = jnp.dot(x_ref[...], wf_ref[...], preferred_element_type=jnp.float32)

    if k_tiles == 1:
        # No VMEM accumulator round-trip at all for the single-K-step case.
        y = y + bf_ref[...].astype(jnp.float32)
        o_ref[...] = (y[:, :tn] * jax.nn.sigmoid(y[:, tn:])).astype(o_ref.dtype)
    else:
        acc_ref, = scratch
        k = pl.program_id(2)

        @pl.when(k == 0)
        def _():                     # direct store — no zero-init + add
            acc_ref[...] = y

        @pl.when(k > 0)
        def _():
            acc_ref[...] += y

        @pl.when(k == k_tiles - 1)
        def _():
            z = acc_ref[...] + bf_ref[...].astype(jnp.float32)
            o_ref[...] = (z[:, :tn] * jax.nn.sigmoid(z[:, tn:])).astype(o_ref.dtype)


# --------------------------------------------------------------------------- #
# One-time parameter fusion (hoisted out of the per-call hot path)
# --------------------------------------------------------------------------- #
def fuse_glu_params(w1, b1, w2, b2, *, block_n=512, block_k=1024,
                    matmul_dtype=jnp.bfloat16):
    """Build the fused, padded, tile-interleaved weight/bias once at init time.

    w1/w2: [input_dim, output_dim]; b1/b2: [output_dim].
    Returns (wf, bf, geom) where geom holds the static kwargs for
    gated_linear_unit().
    """
    input_dim, output_dim = w1.shape

    # N padded only to a multiple of 128 (lane-dense, no extra waste).
    n_pad = _round_up(output_dim, 128)
    tn = min(_round_up(block_n, 128), n_pad)
    while n_pad % tn:                 # tn must divide padded N
        tn -= 128
    # Expose >=2 N tiles when possible so v7x's 2 TensorCores both get work.
    if n_pad // tn == 1 and n_pad >= 256 and (n_pad // 2) % 128 == 0:
        tn = n_pad // 2
    n_tiles = n_pad // tn

    # K tiling (single step when K fits a block).
    if input_dim <= block_k:
        tk = input_dim
        k_pad = input_dim
    else:
        tk = _round_up(block_k, 128)
        k_pad = _round_up(input_dim, tk)

    w1p = jnp.pad(w1, ((0, k_pad - input_dim), (0, n_pad - output_dim)))
    w2p = jnp.pad(w2, ((0, k_pad - input_dim), (0, n_pad - output_dim)))
    b1p = jnp.pad(b1, (0, n_pad - output_dim))
    b2p = jnp.pad(b2, (0, n_pad - output_dim))

    # Tile-interleaved layout: fused output-tile j = [W1 tile j | W2 tile j],
    # so one (tk, 2*tn) block feeds one matmul per grid step.
    wf = jnp.stack(
        [w1p.reshape(k_pad, n_tiles, tn), w2p.reshape(k_pad, n_tiles, tn)],
        axis=2).reshape(k_pad, 2 * n_pad)
    bf = jnp.stack(
        [b1p.reshape(n_tiles, tn), b2p.reshape(n_tiles, tn)],
        axis=1).reshape(1, 2 * n_pad)

    if matmul_dtype is not None:
        wf = wf.astype(matmul_dtype)   # halves weight DMA / VMEM footprint

    geom = dict(tn=tn, tk=tk, output_dim=output_dim, matmul_dtype=matmul_dtype)
    return wf, bf, geom


# --------------------------------------------------------------------------- #
# Forward wrapper
# --------------------------------------------------------------------------- #
@functools.partial(
    jax.jit,
    static_argnames=("tn", "tk", "output_dim", "matmul_dtype", "block_m",
                     "vmem_budget_bytes"))
def gated_linear_unit(x, wf, bf, *, tn, tk, output_dim,
                      matmul_dtype=jnp.bfloat16, block_m=512,
                      vmem_budget_bytes=40 * 1024 * 1024):
    """x: [..., input_dim]; wf/bf: pre-fused weights from fuse_glu_params()."""
    orig_shape = x.shape
    input_dim = orig_shape[-1]

    k_pad = wf.shape[0]
    n_pad = wf.shape[1] // 2
    n_tiles = n_pad // tn
    k_tiles = k_pad // tk

    x2d = x.reshape(-1, input_dim)
    m = x2d.shape[0]

    # Cast activations once in the wrapper (not per-tile in the kernel).
    if matmul_dtype is not None:
        x2d = x2d.astype(matmul_dtype)

    # Only K must be zero-padded (it feeds the reduction). M is left ragged:
    # the grid uses cdiv and the last block's stores are masked by Pallas.
    if k_pad != input_dim:
        x2d = jnp.pad(x2d, ((0, 0), (0, k_pad - input_dim)))

    sublane = {4: 8, 2: 16, 1: 32}.get(x2d.dtype.itemsize, 8)
    bm = min(_round_up(block_m, sublane), _round_up(m, sublane))

    # Cap the VMEM working set (double-buffered inputs/outputs + f32 acc) so the
    # same tile choice also fits v7x's 64 MiB/TC.
    def vmem_bytes(bm_):
        return (2 * (bm_ * tk * x2d.dtype.itemsize
                     + tk * 2 * tn * wf.dtype.itemsize
                     + 2 * tn * bf.dtype.itemsize
                     + bm_ * tn * x.dtype.itemsize)
                + (0 if k_tiles == 1 else bm_ * 2 * tn * 4))

    while vmem_bytes(bm) > vmem_budget_bytes and bm > 2 * sublane:
        bm = _round_up(bm // 2, sublane)

    m_tiles = pl.cdiv(m, bm)
    grid = (m_tiles, n_tiles, k_tiles)

    scratch_shapes = [] if k_tiles == 1 else [pltpu.VMEM((bm, 2 * tn), jnp.float32)]
    kernel = functools.partial(_glu_kernel, tn=tn, k_tiles=k_tiles)

    # Advisory cost estimate (two fused GEMMs; sigmoid ~ exp + reciprocal).
    flops = 2 * m * k_pad * 2 * n_pad
    transcendentals = 2 * m * n_pad
    bytes_accessed = (m * k_pad * x2d.dtype.itemsize
                      + m_tiles * k_pad * 2 * n_pad * wf.dtype.itemsize
                      + m * n_pad * x.dtype.itemsize)

    out = pl.pallas_call(
        kernel,
        out_shape=jax.ShapeDtypeStruct((m, n_pad), x.dtype),
        grid_spec=pltpu.PrefetchScalarGridSpec(
            num_scalar_prefetch=0,
            grid=grid,
            in_specs=[
                pl.BlockSpec((bm, tk), lambda i, j, k: (i, k)),       # x tile
                pl.BlockSpec((tk, 2 * tn), lambda i, j, k: (k, j)),   # fused W
                pl.BlockSpec((1, 2 * tn), lambda i, j, k: (0, j)),    # fused b
            ],
            out_specs=pl.BlockSpec((bm, tn), lambda i, j, k: (i, j)),
            scratch_shapes=scratch_shapes,
        ),
        compiler_params=pltpu.CompilerParams(
            dimension_semantics=("parallel", "parallel", "arbitrary"),
            vmem_limit_bytes=int(min(max(2 * vmem_bytes(bm), 32 << 20), 60 << 20))),
        cost_estimate=pl.CostEstimate(
            flops=flops,
            transcendentals=transcendentals,
            bytes_accessed=bytes_accessed),
    )(x2d, wf, bf)

    if n_pad != output_dim:
        out = out[:, :output_dim]
    return out.reshape(*orig_shape[:-1], output_dim)


# --------------------------------------------------------------------------- #
# Init / reference
# --------------------------------------------------------------------------- #
def init_glu_params(key, input_dim, output_dim, dtype=jnp.float32):
    """Deterministic init mirroring nn.Linear's default U(-1/sqrt(in), 1/sqrt(in))."""
    k1, k2, k3, k4 = jax.random.split(key, 4)
    bound = 1.0 / (input_dim ** 0.5)
    # Stored as [input_dim, output_dim] (transpose of PyTorch's [out, in]).
    w1 = jax.random.uniform(k1, (input_dim, output_dim), dtype, -bound, bound)
    b1 = jax.random.uniform(k2, (output_dim,), dtype, -bound, bound)
    w2 = jax.random.uniform(k3, (input_dim, output_dim), dtype, -bound, bound)
    b2 = jax.random.uniform(k4, (output_dim,), dtype, -bound, bound)
    return w1, b1, w2, b2


def glu_reference(x, w1, b1, w2, b2):
    x1 = x @ w1 + b1
    x2 = jax.nn.sigmoid(x @ w2 + b2)
    return x1 * x2


if __name__ == "__main__":
    key = jax.random.PRNGKey(0)
    kx, kp = jax.random.split(key)

    batch, seq, input_dim, output_dim = 2, 8, 32, 32
    x = jax.random.normal(kx, (batch, seq, input_dim), dtype=jnp.float32)
    w1, b1, w2, b2 = init_glu_params(kp, input_dim, output_dim)
    ref = glu_reference(x, w1, b1, w2, b2)

    # Default (fast) path: bf16 MXU inputs, f32 accumulation/epilogue.
    wf, bf, geom = fuse_glu_params(w1, b1, w2, b2)          # fused once at init
    out = gated_linear_unit(x, wf, bf, **geom)
    out = jax.block_until_ready(out)
    assert out.shape == (batch, seq, output_dim)
    assert jnp.allclose(out, ref, atol=2e-2, rtol=2e-2), float(
        jnp.max(jnp.abs(out - ref)))

    # Exact path: f32 MXU inputs bit-match the f32 reference.
    wf32, bf32, geom32 = fuse_glu_params(w1, b1, w2, b2, matmul_dtype=None)
    out32 = gated_linear_unit(x, wf32, bf32, **geom32)
    out32 = jax.block_until_ready(out32)
    assert jnp.allclose(out32, ref, atol=1e-5, rtol=1e-5), float(
        jnp.max(jnp.abs(out32 - ref)))

    print("KERNEL_OK")
</pallas_src>

<mosaic_0001>
module attributes {stable_mosaic.version = 11 : i64} {
  func.func @_glu_kernel(%arg0: i32, %arg1: i32, %arg2: i32, %arg3: memref<16x32xbf16, #tpu.memory_space<vmem>>, %arg4: memref<32x256xbf16, #tpu.memory_space<vmem>>, %arg5: memref<1x256xf32, #tpu.memory_space<vmem>>, %arg6: memref<16x128xf32, #tpu.memory_space<vmem>>) attributes {dimension_semantics = [#tpu.dimension_semantics<parallel>, #tpu.dimension_semantics<parallel>, #tpu.dimension_semantics<arbitrary>], iteration_bounds = array<i64: 1, 1, 1>, scalar_prefetch = 0 : i64, scratch_operands = 0 : i64, tpu.core_type = #tpu.core_type<tc>, window_params = [{transform_indices = @transform_0, window_bounds = array<i64: 16, 32>}, {transform_indices = @transform_1, window_bounds = array<i64: 32, 256>}, {transform_indices = @transform_2, window_bounds = array<i64: 1, 256>}, {transform_indices = @transform_3, window_bounds = array<i64: 16, 128>}]} {
    %c0 = arith.constant 0 : index
    %c0_0 = arith.constant 0 : index
    %0 = vector.load %arg3[%c0, %c0_0] : memref<16x32xbf16, #tpu.memory_space<vmem>>, vector<16x32xbf16>
    %c0_1 = arith.constant 0 : index
    %c0_2 = arith.constant 0 : index
    %1 = vector.load %arg4[%c0_1, %c0_2] : memref<32x256xbf16, #tpu.memory_space<vmem>>, vector<32x256xbf16>
    %cst = arith.constant dense<0.000000e+00> : vector<16x256xf32>
    %2 = tpu.matmul %0, %1, %cst {dimension_numbers = #tpu.dot_dimension_numbers<[1], [0], [0], [1], [0, 0, 1, 1], [], []>} : vector<16x32xbf16>, vector<32x256xbf16>, vector<16x256xf32> -> vector<16x256xf32>
    %c0_3 = arith.constant 0 : index
    %c0_4 = arith.constant 0 : index
    %3 = vector.load %arg5[%c0_3, %c0_4] : memref<1x256xf32, #tpu.memory_space<vmem>>, vector<1x256xf32>
    %4 = vector.broadcast %3 : vector<1x256xf32> to vector<16x256xf32>
    %5 = arith.addf %2, %4 : vector<16x256xf32>
    %6 = vector.extract_strided_slice %5 {offsets = [0, 0], sizes = [16, 128], strides = [1, 1]} : vector<16x256xf32> to vector<16x128xf32>
    %7 = vector.extract_strided_slice %5 {offsets = [0, 128], sizes = [16, 128], strides = [1, 1]} : vector<16x256xf32> to vector<16x128xf32>
    %8 = arith.negf %7 : vector<16x128xf32>
    %9 = math.exp %8 : vector<16x128xf32>
    %cst_5 = arith.constant 1.000000e+00 : f32
    %10 = vector.broadcast %cst_5 : f32 to vector<16x128xf32>
    %11 = arith.addf %10, %9 : vector<16x128xf32>
    %12 = arith.divf %10, %11 : vector<16x128xf32>
    %13 = arith.mulf %6, %12 : vector<16x128xf32>
    %c0_6 = arith.constant 0 : index
    %c0_7 = arith.constant 0 : index
    %14 = vector.load %arg6[%c0_6, %c0_7] : memref<16x128xf32, #tpu.memory_space<vmem>>, vector<16x128xf32>
    tpu.vector_store %arg6[%c0_6, %c0_7], %13 {strides = array<i32>} : memref<16x128xf32, #tpu.memory_space<vmem>>, vector<16x128xf32>,
    return
  }
  func.func @transform_0(%arg0: i32, %arg1: i32, %arg2: i32) -> (i32, i32) {
    %c0_i32 = arith.constant 0 : i32
    return %arg0, %arg2 : i32, i32
  }
  func.func @transform_1(%arg0: i32, %arg1: i32, %arg2: i32) -> (i32, i32) {
    %c0_i32 = arith.constant 0 : i32
    return %arg2, %arg1 : i32, i32
  }
  func.func @transform_2(%arg0: i32, %arg1: i32, %arg2: i32) -> (i32, i32) {
    %c0_i32 = arith.constant 0 : i32
    %c0_i32_0 = arith.constant 0 : i32
    return %c0_i32, %arg1 : i32, i32
  }
  func.func @transform_3(%arg0: i32, %arg1: i32, %arg2: i32) -> (i32, i32) {
    %c0_i32 = arith.constant 0 : i32
    return %arg0, %arg1 : i32, i32
  }
}

</mosaic_0001>

<bundles_post_ra>
// kernel: gated_linear_unit.1
= control target key start
LH: loop header
LB: loop body
LE: loop exit
PB: predicated region body
PF: predicated region fallthrough
CT: control target
= control target key end

     0   :  { %8 = vsyncpa [#allocation3], 0  ;;  %s191_s12 = smov [#allocation2]   ;;  %s239_s0 = inlined_call_operand.vmem [shape: bf16[16,32], index: 0, kind: input, shape index: {}]   ;;  %s240_s1 = inlined_call_operand.hbm [shape: bf16[32,256], index: 1, kind: input, shape index: {}]   ;;  %s241_s2 = inlined_call_operand.vmem [shape: f32[1,256], index: 2, kind: input, shape index: {}]   ;;  %s242_s3 = inlined_call_operand.vmem [shape: f32[16,128], index: 3, kind: output, shape index: {}]  }
   0x1   :  { %s16_s13 = sshll.u32 %s191_s12, 4  ;;  %s167_s16 = scalar_lea.hbm %s240_s1, 512  ;;  %s17_s13 = int_to_ptr.vmem [resolvable:$true] %s16_s13 }
   0x2   :  { %p168_p0 = scmp.ne.s32.totalorder %s240_s1, %s167_s16  ;;  %p171_p1 = scmp.lt.u32.totalorder %s167_s16, %s240_s1 }
   0x4   :  { %p173_p2 = pnand %p171_p1, %p168_p0 }
   0x6   :  { %176 = shalt.err (!%p173_p2)
}
   0x7   :  { %s177_s21 = scalar_lea.vmem %s17_s13, 512  ;;  %p182_p4 = scmp.lt.s32.totalorder %s17_s13, %s17_s13 }
   0x8   :  { %p178_p3 = scmp.ne.s32.totalorder %s17_s13, %s177_s21  ;;  %p183_p5 = scmp.lt.s32.totalorder %s177_s21, %s177_s21 }
   0xa   :  { %p184_p6 = por %p183_p5, %p182_p4 }
   0xc   :  { %p185_p7 = pnand %p184_p6, %p178_p3 }
   0xe   :  { %188 = shalt.err (!%p185_p7)
}
   0xf   :  { %s192_s22 = smov 128   ;;  %s193_s23 = smov 8  }
  0x10   :  { %22 = dma.hbm_to_vmem [thread:$0]  %s240_s1, 512, %s17_s13, [#allocation3], %s192_s22, %s192_s22, %s193_s23  }
  0x11   :  { %189 = dma.done.wait [#allocation3], 512  }
  0x12   :  { %190 = vsyncadd [#allocation3], 4294966784  ;;  %v194_v0 = vmov 0   ;;  %v152_v1 = vld [vmem:[#allocation2 + $0x4] ss:$8 sps:$4 sm:$0xff]   ;;  %vm72_vm0 = vcmask 261120   ;;  %v37_v6 = vlaneseq }
  0x13   :  { %108 = vmatprep.mubr.bf16.mxu0 %v194_v0  ;;  %v154_v2 = vld [vmem:[#allocation2] ss:$8 sps:$4 sm:$0xff]   ;;  %76 = vmatprep.subr.bf16.mxu0 %v152_v1  ;;  %v155_v3 = vld [vmem:[#allocation2 + $0x14] ss:$8 sps:$4 sm:$0xff]   ;;  %v157_v4 = vld [vmem:[#allocation2 + $0x10] ss:$8 sps:$4 sm:$0xff]  }
  0x14   :  { %77 = vmatpush1.bf16.msra.mxu0 %v154_v2  ;;  %v158_v5 = vld [vmem:[%s239_s0] sm:$0xff]   ;;  %v38_v7 = vshrl.u32 %v37_v6, 7 }
  0x15   :  { %78 = vmatprep.subr.bf16.mxu0 %v155_v3  ;;  %v35_v9 = vld [vmem:[%s241_s2] sm:$0x3] }
  0x16   :  { %v43_v8 = vsub.s32 1, %v38_v7  ;;  %v39_v23 = vsub.s32 0, %v38_v7 }
  0x18   :  { %79 = vmatpush1.bf16.msra.mxu0 %v157_v4  ;;  %v44_v10 = vrot.slane %v35_v9, %v43_v8  ;;  %v40_v24 = vrot.slane %v35_v9, %v39_v23 }
  0x1b   :  { %145 = vmatmul.mubr.msk.bf16.vlgmr.msra.gmra.mrb[0].mxu0 %vm72_vm0, %v158_v5 }
  0xee   :  { %v110_v11 = vpop.f32.mrb[0].mxu0 }
  0xef   :  { %v112_v12 = vpop.f32.mrb[1].mxu0  ;;  %v111_v25 = vadd.f32 %v110_v11, %v40_v24 }
  0xf0   :  { %v113_v13 = vadd.f32 %v112_v12, %v44_v10  ;;  %v114_v14 = vpop.f32.mrb[2].mxu0 }
  0xf1   :  { %v116_v15 = vpop.f32.mrb[3].mxu0  ;;  %v115_v28 = vadd.f32 %v114_v14, %v40_v24 }
  0xf2   :  { %v146_v16 = vmul.f32 -1.442695, %v113_v13  ;;  %v117_v17 = vadd.f32 %v116_v15, %v44_v10 }
  0xf4   :  { %159 = vpow2.f32 %v146_v16  ;;  %v147_v18 = vmul.f32 -1.442695, %v117_v17 }
  0xf6   :  { %161 = vpow2.f32 %v147_v18 }
  0xfe   :  { %v160_v19 = vpop.eup %159 }
  0xff   :  { %v125_v20 = vadd.f32 1.0, %v160_v19 }
 0x100   :  { %v162_v21 = vpop.eup %161 }
 0x101   :  { %163 = vrcp.f32 %v125_v20  ;;  %v126_v22 = vadd.f32 1.0, %v162_v21 }
 0x103   :  { %165 = vrcp.f32 %v126_v22 }
 0x10b   :  { %v164_v26 = vpop.eup %163 }
 0x10c   :  { %v131_v27 = vmul.f32 %v164_v26, %v111_v25 }
 0x10d   :  { %v166_v29 = vpop.eup %165 }
 0x10e   :  { %133 = vst [vmem:[%s242_s3] sm:$0xff] %v131_v27  ;;  %v132_v30 = vmul.f32 %v166_v29, %v115_v28 }
 0x110   :  { %134 = vst [vmem:[%s242_s3 + $0x8] sm:$0xff] %v132_v30 }
 0x111   :  { %139 = vsyncpa [#allocation3], 1 }

</bundles_post_ra>
